<compile_context>
chip_gen: v5e
topology: v5e:2x2
jax: 0.10.0
libtpu: 0.0.40
codegen_flags: <defaults>
</compile_context>

<pallas_src>
import jax
import jax.numpy as jnp
from jax.experimental import pallas as pl
from jax.experimental.pallas import tpu as pltpu


def _round_up(x, m):
    return ((x + m - 1) // m) * m


def _pick_tile(dp, target):
    """Largest divisor of dp <= target; prefer multiples of 256 (v6e/v7x MXU),
    fall back to 128 (always divides dp since dp % 128 == 0)."""
    for gran in (256, 128):
        t = (min(target, dp) // gran) * gran
        while t >= gran:
            if dp % t == 0:
                return t
            t -= gran
    return dp


# ----------------------------- Kernels --------------------------------------

def _inverted_l_kernel_noacc(x_ref, w_ref, c_ref, o_ref):
    """grid = (M tiles, N tiles); whole K dim resident (small-D fast path)."""
    o_ref[...] = (
        jnp.dot(x_ref[...], w_ref[...], preferred_element_type=jnp.float32)
        + c_ref[...]
    ).astype(o_ref.dtype)


def _inverted_l_kernel_acc(x_ref, w_ref, c_ref, o_ref, acc_ref):
    """grid = (M tiles, N tiles, K tiles); f32 VMEM accumulator (large-D path)."""
    k = pl.program_id(2)

    @pl.when(k == 0)
    def _():
        acc_ref[...] = jnp.zeros_like(acc_ref)

    acc_ref[...] += jnp.dot(
        x_ref[...], w_ref[...], preferred_element_type=jnp.float32
    )

    @pl.when(k == pl.num_programs(2) - 1)
    def _():
        o_ref[...] = (acc_ref[...] + c_ref[...]).astype(o_ref.dtype)


# ------------------------------ Glue -----------------------------------------

def _prepare(inverted_weight, inverted_bias, use_bf16):
    """Compute inv(W)^T and the folded bias term once; pad to 128 lanes."""
    D = inverted_weight.shape[0]
    mm_dtype = jnp.bfloat16 if use_bf16 else jnp.float32
    # TODO(synk): PyTorch's torch.linalg.solve (LU + triangular solve) has no
    # clean Pallas equivalent; the inverse stays in jnp glue.
    winv_t = jnp.linalg.inv(inverted_weight.astype(jnp.float32)).T       # (D, D)
    c = -(inverted_bias.reshape(1, D).astype(jnp.float32) @ winv_t)      # (1, D)
    Dp = _round_up(D, 128)
    if Dp != D:
        winv_t = jnp.pad(winv_t, ((0, Dp - D), (0, Dp - D)))
        c = jnp.pad(c, ((0, 0), (0, Dp - D)))
    return winv_t.astype(mm_dtype), c, D, Dp, mm_dtype


def _apply(x, w_p, c_p, D, Dp, mm_dtype, *,
           tm_target=512, tn_target=512, tk_target=512):
    """out = x @ inv(W)^T + c  via pallas_call; x: (N, D)."""
    N = x.shape[0]
    out_dtype = x.dtype
    itm = jnp.dtype(mm_dtype).itemsize
    ito = jnp.dtype(out_dtype).itemsize

    # Tile sizing: lanes multiple of 128 (prefer 256), sublanes multiple of 8.
    tm = _round_up(N, 8) if N <= tm_target else tm_target
    Np = _round_up(N, tm)
    tn = _pick_tile(Dp, tn_target)

    # Only pad x when actually required (avoid a gratuitous extra HBM pass).
    x_c = x.astype(mm_dtype)
    if (Np, Dp) != (N, D):
        x_p = jnp.pad(x_c, ((0, Np - N), (0, Dp - D)))
    else:
        x_p = x_c

    # Fast path: whole contraction dim resident per tile (no K axis / no acc).
    fast = Dp * itm <= 8 * 1024

    cost = pl.CostEstimate(
        flops=2 * Np * Dp * Dp,
        transcendentals=0,
        bytes_accessed=(Np * Dp * itm
                        + (Np // tm) * Dp * Dp * itm   # weight re-streamed per M tile
                        + Np * Dp * ito),
    )

    if fast:
        vmem_est = (2 * tm * Dp * itm + 2 * Dp * tn * itm
                    + 2 * tm * tn * ito + 2 * tn * 4)
        grid = (Np // tm, Dp // tn)
        in_specs = [
            pl.BlockSpec((tm, Dp), lambda i, j: (i, 0)),   # x row slab
            pl.BlockSpec((Dp, tn), lambda i, j: (0, j)),   # inv(W)^T column slab
            pl.BlockSpec((1, tn), lambda i, j: (0, j)),    # folded bias
        ]
        out_specs = pl.BlockSpec((tm, tn), lambda i, j: (i, j))
        scratch = []
        kernel = _inverted_l_kernel_noacc
        semantics = ("parallel", "parallel")
    else:
        tk = _pick_tile(Dp, tk_target)
        vmem_est = (2 * tm * tk * itm + 2 * tk * tn * itm
                    + 2 * tm * tn * ito + tm * tn * 4 + 2 * tn * 4)
        grid = (Np // tm, Dp // tn, Dp // tk)
        in_specs = [
            pl.BlockSpec((tm, tk), lambda i, j, k: (i, k)),   # x tile
            pl.BlockSpec((tk, tn), lambda i, j, k: (k, j)),   # inv(W)^T tile
            pl.BlockSpec((1, tn), lambda i, j, k: (0, j)),    # folded bias
        ]
        out_specs = pl.BlockSpec((tm, tn), lambda i, j, k: (i, j))
        scratch = [pltpu.VMEM((tm, tn), jnp.float32)]
        kernel = _inverted_l_kernel_acc
        semantics = ("parallel", "parallel", "arbitrary")

    # Constant-in-D footprint; 48 MiB cap is safe even on v7x (64 MiB / TC).
    vmem_limit = int(min(48 * 1024 * 1024, max(32 * 1024 * 1024, 2 * vmem_est)))

    out_p = pl.pallas_call(
        kernel,
        out_shape=jax.ShapeDtypeStruct((Np, Dp), out_dtype),
        grid_spec=pltpu.PrefetchScalarGridSpec(
            num_scalar_prefetch=0,
            grid=grid,
            in_specs=in_specs,
            out_specs=out_specs,
            scratch_shapes=scratch,
        ),
        compiler_params=pltpu.CompilerParams(
            dimension_semantics=semantics,
            vmem_limit_bytes=vmem_limit,
        ),
        cost_estimate=cost,
    )(x_p, w_p, c_p)

    if (Np, Dp) != (N, D):
        out_p = out_p[:N, :D]
    return out_p


def make_inverted_l_forward(inverted_weight, inverted_bias, *, use_bf16=False):
    """Hoist the O(D^3) inverse / bias fold / weight padding out of the
    per-call path; returns a jitted x -> (x - bias) @ inv(W)^T."""
    w_p, c_p, D, Dp, mm_dtype = _prepare(inverted_weight, inverted_bias, use_bf16)
    w_p = jax.device_put(w_p)
    c_p = jax.device_put(c_p)

    def apply(x):
        return _apply(x, w_p, c_p, D, Dp, mm_dtype)

    return jax.jit(apply)


def inverted_l_forward(x, inverted_weight, inverted_bias, *, use_bf16=False):
    """One-shot convenience wrapper (glue recomputed each call)."""
    w_p, c_p, D, Dp, mm_dtype = _prepare(inverted_weight, inverted_bias, use_bf16)
    return _apply(x, w_p, c_p, D, Dp, mm_dtype)


if __name__ == "__main__":
    key = jax.random.PRNGKey(0)
    k_x, k_w, k_b = jax.random.split(key, 3)

    N, D = 8, 32
    x = jax.random.normal(k_x, (N, D), dtype=jnp.float32)
    # Well-conditioned square weight: identity + small random perturbation.
    inverted_weight = (
        jnp.eye(D, dtype=jnp.float32)
        + 0.1 * jax.random.normal(k_w, (D, D), dtype=jnp.float32)
    )
    inverted_bias = jax.random.normal(k_b, (D,), dtype=jnp.float32)

    forward = make_inverted_l_forward(inverted_weight, inverted_bias)
    out = forward(x)
    out = jax.block_until_ready(out)

    # Reference: exact PyTorch semantics in plain JAX.
    y_tilde = (x - inverted_bias).T                       # (D, N)
    x_tilde = jnp.linalg.solve(inverted_weight, y_tilde)  # (D, N)
    ref = x_tilde.T                                       # (N, D)

    assert out.shape == (N, D)
    assert jnp.allclose(out, ref, atol=1e-4, rtol=1e-4), (
        f"max abs err = {jnp.max(jnp.abs(out - ref))}"
    )
    print("KERNEL_OK")
</pallas_src>

<mosaic_0001>
module attributes {stable_mosaic.version = 11 : i64} {
  func.func @_inverted_l_kernel_noacc(%arg0: i32, %arg1: i32, %arg2: memref<8x128xf32, #tpu.memory_space<vmem>>, %arg3: memref<128x128xf32, #tpu.memory_space<vmem>>, %arg4: memref<1x128xf32, #tpu.memory_space<vmem>>, %arg5: memref<8x128xf32, #tpu.memory_space<vmem>>) attributes {dimension_semantics = [#tpu.dimension_semantics<parallel>, #tpu.dimension_semantics<parallel>], iteration_bounds = array<i64: 1, 1>, scalar_prefetch = 0 : i64, scratch_operands = 0 : i64, tpu.core_type = #tpu.core_type<tc>, window_params = [{transform_indices = @transform_0, window_bounds = array<i64: 8, 128>}, {transform_indices = @transform_1, window_bounds = array<i64: 128, 128>}, {transform_indices = @transform_2, window_bounds = array<i64: 1, 128>}, {transform_indices = @transform_3, window_bounds = array<i64: 8, 128>}]} {
    %c0 = arith.constant 0 : index
    %c0_0 = arith.constant 0 : index
    %0 = vector.load %arg2[%c0, %c0_0] : memref<8x128xf32, #tpu.memory_space<vmem>>, vector<8x128xf32>
    %c0_1 = arith.constant 0 : index
    %c0_2 = arith.constant 0 : index
    %1 = vector.load %arg3[%c0_1, %c0_2] : memref<128x128xf32, #tpu.memory_space<vmem>>, vector<128x128xf32>
    %cst = arith.constant dense<0.000000e+00> : vector<8x128xf32>
    %2 = tpu.matmul %0, %1, %cst {dimension_numbers = #tpu.dot_dimension_numbers<[1], [0], [0], [1], [0, 0, 1, 1], [], []>} : vector<8x128xf32>, vector<128x128xf32>, vector<8x128xf32> -> vector<8x128xf32>
    %c0_3 = arith.constant 0 : index
    %c0_4 = arith.constant 0 : index
    %3 = vector.load %arg4[%c0_3, %c0_4] : memref<1x128xf32, #tpu.memory_space<vmem>>, vector<1x128xf32>
    %4 = vector.broadcast %3 : vector<1x128xf32> to vector<8x128xf32>
    %5 = arith.addf %2, %4 : vector<8x128xf32>
    %c0_5 = arith.constant 0 : index
    %c0_6 = arith.constant 0 : index
    %6 = vector.load %arg5[%c0_5, %c0_6] : memref<8x128xf32, #tpu.memory_space<vmem>>, vector<8x128xf32>
    tpu.vector_store %arg5[%c0_5, %c0_6], %5 {strides = array<i32>} : memref<8x128xf32, #tpu.memory_space<vmem>>, vector<8x128xf32>,
    return
  }
  func.func @transform_0(%arg0: i32, %arg1: i32) -> (i32, i32) {
    %c0_i32 = arith.constant 0 : i32
    %c0_i32_0 = arith.constant 0 : i32
    return %arg0, %c0_i32 : i32, i32
  }
  func.func @transform_1(%arg0: i32, %arg1: i32) -> (i32, i32) {
    %c0_i32 = arith.constant 0 : i32
    %c0_i32_0 = arith.constant 0 : i32
    return %c0_i32, %arg1 : i32, i32
  }
  func.func @transform_2(%arg0: i32, %arg1: i32) -> (i32, i32) {
    %c0_i32 = arith.constant 0 : i32
    %c0_i32_0 = arith.constant 0 : i32
    return %c0_i32, %arg1 : i32, i32
  }
  func.func @transform_3(%arg0: i32, %arg1: i32) -> (i32, i32) {
    %c0_i32 = arith.constant 0 : i32
    return %arg0, %arg1 : i32, i32
  }
}

</mosaic_0001>

<bundles_post_ra>
// kernel: apply.1
= control target key start
LH: loop header
LB: loop body
LE: loop exit
PB: predicated region body
PF: predicated region fallthrough
CT: control target
= control target key end

     0   :  { %8 = vsyncpa [#allocation3], 0  ;;  %s183_s0 = inlined_call_operand.vmem [shape: f32[8,128], index: 0, kind: input, shape index: {}]   ;;  %s184_s1 = inlined_call_operand.hbm [shape: f32[128,128], index: 1, kind: input, shape index: {}]   ;;  %s185_s2 = inlined_call_operand.vmem [shape: f32[1,128], index: 2, kind: input, shape index: {}]   ;;  %s186_s3 = inlined_call_operand.hbm [shape: f32[8,128], index: 3, kind: output, shape index: {}]  }
   0x1   :  { %9 = vsyncpa [#allocation4], 0  ;;  %s16_s14 = sshll.u32 %s184_s1, 4  ;;  %s147_s15 = smov [#allocation2]   ;;  %s17_s14 = int_to_ptr.hbm [resolvable:$true] %s16_s14 }
   0x2   :  { %s18_s16 = sshll.u32 %s147_s15, 4  ;;  %s148_s17 = smov 128   ;;  %s19_s16 = int_to_ptr.vmem [resolvable:$true] %s18_s16 }
   0x3   :  { %s149_s18 = smov 8  }
   0x4   :  { %24 = dma.hbm_to_vmem [thread:$0]  %s17_s14, 2048, %s19_s16, [#allocation3], %s148_s17, %s148_s17, %s149_s18  }
   0x5   :  { %143 = dma.done.wait [#allocation3], 2048  }
   0x6   :  { %144 = vsyncadd [#allocation3], 4294965248  ;;  %v47_v0 = vld [vmem:[#allocation2 + $0x78] sm:$0xff]  ;;  %v46_v1 = vld [vmem:[#allocation2 + $0x70] sm:$0xff]  ;;  %s150_s22 = smov [#allocation5]   ;;  %s80_s26 = sshll.u32 %s186_s3, 4  ;;  %s81_s26 = int_to_ptr.hbm [resolvable:$true] %s80_s26 }
   0x7   :  { %52 = vmatpush.msra.mxu0 %v47_v0  ;;  %v45_v2 = vld [vmem:[#allocation2 + $0x68] sm:$0xff]  ;;  %v44_v3 = vld [vmem:[#allocation2 + $0x60] sm:$0xff]  ;;  %v43_v4 = vld [vmem:[#allocation2 + $0x58] sm:$0xff]  ;;  %s78_s23 = sshll.u32 %s150_s22, 4  ;;  %s79_s23 = int_to_ptr.vmem [resolvable:$true] %s78_s23 }
   0x8   :  { %v42_v5 = vld [vmem:[#allocation2 + $0x50] sm:$0xff]  ;;  %v41_v6 = vld [vmem:[#allocation2 + $0x48] sm:$0xff]  ;;  %v40_v7 = vld [vmem:[#allocation2 + $0x40] sm:$0xff] }
   0x9   :  { %53 = vmatpush.msra.mxu0 %v46_v1  ;;  %v39_v8 = vld [vmem:[#allocation2 + $0x38] sm:$0xff]  ;;  %v38_v9 = vld [vmem:[#allocation2 + $0x30] sm:$0xff]  ;;  %v37_v10 = vld [vmem:[#allocation2 + $0x28] sm:$0xff] }
   0xa   :  { %v36_v11 = vld [vmem:[#allocation2 + $0x20] sm:$0xff]  ;;  %v35_v12 = vld [vmem:[#allocation2 + $0x18] sm:$0xff]  ;;  %v34_v13 = vld [vmem:[#allocation2 + $0x10] sm:$0xff] }
   0xb   :  { %54 = vmatpush.msra.mxu0 %v45_v2  ;;  %v33_v14 = vld [vmem:[#allocation2 + $0x8] sm:$0xff]  ;;  %v32_v15 = vld [vmem:[#allocation2] sm:$0xff] }
   0xc   :  { %v31_v16 = vld [vmem:[%s183_s0] sm:$0xff] }
   0xd   :  { %55 = vmatpush.msra.mxu0 %v44_v3  ;;  %v94_v17 = vld [vmem:[%s185_s2] ss:$0 sm:$0xff] }
   0xf   :  { %56 = vmatpush.msra.mxu0 %v43_v4 }
  0x11   :  { %57 = vmatpush.msra.mxu0 %v42_v5 }
  0x13   :  { %58 = vmatpush.msra.mxu0 %v41_v6 }
  0x15   :  { %59 = vmatpush.msra.mxu0 %v40_v7 }
  0x17   :  { %60 = vmatpush.msra.mxu0 %v39_v8 }
  0x19   :  { %61 = vmatpush.msra.mxu0 %v38_v9 }
  0x1b   :  { %62 = vmatpush.msra.mxu0 %v37_v10 }
  0x1d   :  { %63 = vmatpush.msra.mxu0 %v36_v11 }
  0x1f   :  { %64 = vmatpush.msra.mxu0 %v35_v12 }
  0x21   :  { %65 = vmatpush.msra.mxu0 %v34_v13 }
  0x23   :  { %66 = vmatpush.msra.mxu0 %v33_v14 }
  0x25   :  { %67 = vmatpush.msra.mxu0 %v32_v15 }
  0x26   :  { %68 = vmatmul.f32.vlgmr.msra.gmra.mxu0 %v31_v16 }
  0xa3   :  { %v69_v18 = vpop.f32.mrf.mxu0 }
  0xa4   :  { %v70_v19 = vadd.f32 %v94_v17, %v69_v18 }
  0xa6   :  { %72 = vst [vmem:[#allocation5] sm:$0xff] %v70_v19 }
  0xa7   :  { %83 = dma.vmem_to_hbm [thread:$0]  %s79_s23, 128, %s81_s26, [#allocation4]  }
  0xa8   :  { %145 = dma.done.wait [#allocation4], 128  }
  0xa9   :  { %146 = vsyncadd [#allocation4], 4294967168 }
  0xaa   :  { %88 = vsyncpa [#allocation3], 1 }
  0xab   :  { %89 = vsyncpa [#allocation4], 1 }

</bundles_post_ra>
